<compile_context>
chip_gen: v7x
topology: tpu7x:2x2x1
jax: 0.10.0
libtpu: 0.0.40
codegen_flags: <defaults>
</compile_context>

<pallas_src>
import math

import jax
import jax.numpy as jnp
from jax.experimental import pallas as pl
from jax.experimental.pallas import tpu as pltpu

SIGMA_MAX = 50.0
SIGMA_MIN = 0.01
_LOG_SIGMA_MIN = math.log(SIGMA_MIN)
_LOG_RATIO = math.log(SIGMA_MAX / SIGMA_MIN)


def _silu(h):
    return h * jax.nn.sigmoid(h)


def unet2d_kernel(x_ref, t_ref,
                  w1x_ref, w1s_ref, b1_ref,
                  w2_ref, b2_ref,
                  w3_ref, b3_ref,
                  w4_ref, b4_ref,
                  o_ref):
    # Batch-on-lane layout: x_ref [2, TB], t_ref [1, TB], o_ref [2, TB].
    x = x_ref[...]
    t = t_ref[...]

    # log(sigma_min * (sigma_max/sigma_min)**t) == log(sigma_min) + t*log(ratio)
    # -> one VPU FMA instead of pow+log transcendentals.
    log_sigma = _LOG_SIGMA_MIN + t * _LOG_RATIO              # [1, TB]

    # Layer 1, Linear(3, 64): K=3 matmul decomposed into rank-1 broadcast
    # FMAs on the VPU (an MXU push for K=3 would be pure latency).
    h = (w1x_ref[:, 0:1] * x[0:1, :]
         + w1x_ref[:, 1:2] * x[1:2, :]
         + w1s_ref[...] * log_sigma
         + b1_ref[...])                                      # [64, TB] f32
    h = _silu(h)

    # Layer 2, Linear(64, 128) + SiLU.  bf16 MXU inputs, f32 accumulation.
    h = jnp.dot(w2_ref[...], h.astype(jnp.bfloat16),
                preferred_element_type=jnp.float32) + b2_ref[...]
    h = _silu(h)

    # Layer 3, Linear(128, 64) + SiLU.
    h = jnp.dot(w3_ref[...], h.astype(jnp.bfloat16),
                preferred_element_type=jnp.float32) + b3_ref[...]
    h = _silu(h)

    # Layer 4, Linear(64, 2).  Tiny output row count; keep f32.
    o_ref[...] = (jnp.dot(w4_ref[...], h,
                          preferred_element_type=jnp.float32)
                  + b4_ref[...]).astype(o_ref.dtype)


def init_params(key):
    """PyTorch-style Linear init, weights stored as [in_features, out_features]."""
    dims = [(3, 64), (64, 128), (128, 64), (64, 2)]
    params = []
    for (fan_in, fan_out) in dims:
        key, kw, kb = jax.random.split(key, 3)
        bound = 1.0 / jnp.sqrt(fan_in)
        w = jax.random.uniform(kw, (fan_in, fan_out), jnp.float32, -bound, bound)
        b = jax.random.uniform(kb, (fan_out,), jnp.float32, -bound, bound)
        params += [w, b]
    return tuple(params)


def _pick_tb(padded_b):
    # Prefer big lane-dense tiles (fills the MXU M dimension, amortizes the
    # ~0.35us/step pipeline overhead) while keeping grid >= 2 so both v7x
    # TensorCores get work via the "parallel" grid axis.
    for tb in (1024, 512, 256, 128):
        if padded_b % tb == 0 and padded_b // tb >= 2:
            return tb
    return padded_b


def unet2d_forward(x, t, params, *, tb=None):
    B = x.shape[0]
    w1, b1, w2, b2, w3, b3, w4, b4 = params

    # Pad batch to a multiple of 128 lanes so every tile is lane-dense.
    Bp = max(128, ((B + 127) // 128) * 128)
    if tb is None:
        tb = _pick_tb(Bp)
    assert Bp % tb == 0

    x_t = x.astype(jnp.float32).T                       # [2, B]
    t_t = t.reshape(-1)[None, :].astype(jnp.float32)    # [1, B]
    if Bp != B:
        x_t = jnp.pad(x_t, ((0, 0), (0, Bp - B)))
        t_t = jnp.pad(t_t, ((0, 0), (0, Bp - B)))

    # Weights in [out_features, in_features] so the kernel computes W @ h.
    w1t = w1.T                                          # [64, 3]
    w1x = w1t[:, :2]                                    # [64, 2]  (applied to x)
    w1s = w1t[:, 2:3]                                   # [64, 1]  (applied to log_sigma)
    w2t = w2.T.astype(jnp.bfloat16)                     # [128, 64]  bf16 MXU operand
    w3t = w3.T.astype(jnp.bfloat16)                     # [64, 128]  bf16 MXU operand
    w4t = w4.T                                          # [2, 64]

    def rep(shape):
        # Grid-invariant (replicated) block == full array; Pallas keeps it
        # resident in VMEM instead of re-DMAing it every grid step.
        return pl.BlockSpec(shape, lambda i: (0,) * len(shape))

    out_t = pl.pallas_call(
        unet2d_kernel,
        out_shape=jax.ShapeDtypeStruct((2, Bp), jnp.float32),
        grid_spec=pltpu.PrefetchScalarGridSpec(
            num_scalar_prefetch=0,
            grid=(Bp // tb,),
            in_specs=[
                pl.BlockSpec((2, tb), lambda i: (0, i)),        # x  (batch on lanes)
                pl.BlockSpec((1, tb), lambda i: (0, i)),        # t
                rep((64, 2)),  rep((64, 1)),  rep((64, 1)),     # W1x, W1s, b1
                rep((128, 64)), rep((128, 1)),                  # W2, b2
                rep((64, 128)), rep((64, 1)),                   # W3, b3
                rep((2, 64)),   rep((2, 1)),                    # W4, b4
            ],
            out_specs=pl.BlockSpec((2, tb), lambda i: (0, i)),
        ),
        compiler_params=pltpu.CompilerParams(
            dimension_semantics=("parallel",)),
    )(x_t, t_t,
      w1x, w1s, b1.reshape(64, 1),
      w2t, b2.reshape(128, 1),
      w3t, b3.reshape(64, 1),
      w4t, b4.reshape(2, 1))

    return out_t[:, :B].T                               # back to [B, 2]


def unet2d_reference(x, t, params):
    w1, b1, w2, b2, w3, b3, w4, b4 = params
    log_sigma = jnp.log(SIGMA_MIN * (SIGMA_MAX / SIGMA_MIN) ** t)[:, None]
    inp = jnp.concatenate([x, log_sigma], axis=-1)
    h = jax.nn.silu(inp @ w1 + b1)
    h = jax.nn.silu(h @ w2 + b2)
    h = jax.nn.silu(h @ w3 + b3)
    return h @ w4 + b4


if __name__ == "__main__":
    key = jax.random.PRNGKey(0)
    kp, kx, kt = jax.random.split(key, 3)

    params = init_params(kp)

    B = 256
    x = jax.random.normal(kx, (B, 2), jnp.float32)       # 2-D samples
    t = jax.random.uniform(kt, (B,), jnp.float32)        # diffusion times in [0,1)

    out = unet2d_forward(x, t, params)
    out = jax.block_until_ready(out)

    ref = unet2d_reference(x, t, params)
    assert out.shape == (B, 2)
    # Tolerance reflects bf16 MXU inputs for the two middle layers
    # (accumulation stays f32); the f32-only path agrees to ~1e-6.
    assert jnp.allclose(out, ref, atol=5e-2, rtol=5e-2), "Pallas output mismatch vs reference"

    print("KERNEL_OK")
</pallas_src>

<mosaic_0001>
module attributes {stable_mosaic.version = 11 : i64} {
  func.func @unet2d_kernel(%arg0: i32, %arg1: memref<2x128xf32, #tpu.memory_space<vmem>>, %arg2: memref<1x128xf32, #tpu.memory_space<vmem>>, %arg3: memref<64x2xf32, #tpu.memory_space<vmem>>, %arg4: memref<64x1xf32, #tpu.memory_space<vmem>>, %arg5: memref<64x1xf32, #tpu.memory_space<vmem>>, %arg6: memref<128x64xbf16, #tpu.memory_space<vmem>>, %arg7: memref<128x1xf32, #tpu.memory_space<vmem>>, %arg8: memref<64x128xbf16, #tpu.memory_space<vmem>>, %arg9: memref<64x1xf32, #tpu.memory_space<vmem>>, %arg10: memref<2x64xf32, #tpu.memory_space<vmem>>, %arg11: memref<2x1xf32, #tpu.memory_space<vmem>>, %arg12: memref<2x128xf32, #tpu.memory_space<vmem>>) attributes {dimension_semantics = [#tpu.dimension_semantics<parallel>], iteration_bounds = array<i64: 2>, scalar_prefetch = 0 : i64, scratch_operands = 0 : i64, tpu.core_type = #tpu.core_type<tc>, window_params = [{transform_indices = @transform_0, window_bounds = array<i64: 2, 128>}, {transform_indices = @transform_1, window_bounds = array<i64: 1, 128>}, {pipeline_mode = #tpu.pipeline_mode<synchronous>, transform_indices = @transform_2, window_bounds = array<i64: 64, 2>}, {pipeline_mode = #tpu.pipeline_mode<synchronous>, transform_indices = @transform_3, window_bounds = array<i64: 64, 1>}, {pipeline_mode = #tpu.pipeline_mode<synchronous>, transform_indices = @transform_4, window_bounds = array<i64: 64, 1>}, {pipeline_mode = #tpu.pipeline_mode<synchronous>, transform_indices = @transform_5, window_bounds = array<i64: 128, 64>}, {pipeline_mode = #tpu.pipeline_mode<synchronous>, transform_indices = @transform_6, window_bounds = array<i64: 128, 1>}, {pipeline_mode = #tpu.pipeline_mode<synchronous>, transform_indices = @transform_7, window_bounds = array<i64: 64, 128>}, {pipeline_mode = #tpu.pipeline_mode<synchronous>, transform_indices = @transform_8, window_bounds = array<i64: 64, 1>}, {pipeline_mode = #tpu.pipeline_mode<synchronous>, transform_indices = @transform_9, window_bounds = array<i64: 2, 64>}, {pipeline_mode = #tpu.pipeline_mode<synchronous>, transform_indices = @transform_10, window_bounds = array<i64: 2, 1>}, {transform_indices = @transform_11, window_bounds = array<i64: 2, 128>}]} {
    %c0 = arith.constant 0 : index
    %c0_0 = arith.constant 0 : index
    %0 = vector.load %arg1[%c0, %c0_0] : memref<2x128xf32, #tpu.memory_space<vmem>>, vector<2x128xf32>
    %c0_1 = arith.constant 0 : index
    %c0_2 = arith.constant 0 : index
    %1 = vector.load %arg2[%c0_1, %c0_2] : memref<1x128xf32, #tpu.memory_space<vmem>>, vector<1x128xf32>
    %cst = arith.constant 8.51719284 : f32
    %2 = vector.broadcast %cst : f32 to vector<1x128xf32>
    %3 = arith.mulf %1, %2 : vector<1x128xf32>
    %cst_3 = arith.constant -4.60517025 : f32
    %4 = vector.broadcast %cst_3 : f32 to vector<1x128xf32>
    %5 = arith.addf %4, %3 : vector<1x128xf32>
    %c0_4 = arith.constant 0 : index
    %c0_5 = arith.constant 0 : index
    %6 = vector.load %arg3[%c0_4, %c0_5] : memref<64x2xf32, #tpu.memory_space<vmem>>, vector<64x1xf32>
    %7 = vector.extract_strided_slice %0 {offsets = [0, 0], sizes = [1, 128], strides = [1, 1]} : vector<2x128xf32> to vector<1x128xf32>
    %8 = vector.broadcast %6 : vector<64x1xf32> to vector<64x128xf32>
    %9 = vector.broadcast %7 : vector<1x128xf32> to vector<64x128xf32>
    %10 = arith.mulf %8, %9 : vector<64x128xf32>
    %c0_6 = arith.constant 0 : index
    %c1 = arith.constant 1 : index
    %11 = vector.load %arg3[%c0_6, %c1] : memref<64x2xf32, #tpu.memory_space<vmem>>, vector<64x1xf32>
    %12 = vector.extract_strided_slice %0 {offsets = [1, 0], sizes = [1, 128], strides = [1, 1]} : vector<2x128xf32> to vector<1x128xf32>
    %13 = vector.broadcast %11 : vector<64x1xf32> to vector<64x128xf32>
    %14 = vector.broadcast %12 : vector<1x128xf32> to vector<64x128xf32>
    %15 = arith.mulf %13, %14 : vector<64x128xf32>
    %16 = arith.addf %10, %15 : vector<64x128xf32>
    %c0_7 = arith.constant 0 : index
    %c0_8 = arith.constant 0 : index
    %17 = vector.load %arg4[%c0_7, %c0_8] : memref<64x1xf32, #tpu.memory_space<vmem>>, vector<64x1xf32>
    %18 = vector.broadcast %17 : vector<64x1xf32> to vector<64x128xf32>
    %19 = vector.broadcast %5 : vector<1x128xf32> to vector<64x128xf32>
    %20 = arith.mulf %18, %19 : vector<64x128xf32>
    %21 = arith.addf %16, %20 : vector<64x128xf32>
    %c0_9 = arith.constant 0 : index
    %c0_10 = arith.constant 0 : index
    %22 = vector.load %arg5[%c0_9, %c0_10] : memref<64x1xf32, #tpu.memory_space<vmem>>, vector<64x1xf32>
    %23 = vector.broadcast %22 : vector<64x1xf32> to vector<64x128xf32>
    %24 = arith.addf %21, %23 : vector<64x128xf32>
    %25 = arith.negf %24 : vector<64x128xf32>
    %26 = math.exp %25 : vector<64x128xf32>
    %cst_11 = arith.constant 1.000000e+00 : f32
    %27 = vector.broadcast %cst_11 : f32 to vector<64x128xf32>
    %28 = arith.addf %27, %26 : vector<64x128xf32>
    %29 = arith.divf %27, %28 : vector<64x128xf32>
    %30 = arith.mulf %24, %29 : vector<64x128xf32>
    %c0_12 = arith.constant 0 : index
    %c0_13 = arith.constant 0 : index
    %31 = vector.load %arg6[%c0_12, %c0_13] : memref<128x64xbf16, #tpu.memory_space<vmem>>, vector<128x64xbf16>
    %32 = arith.truncf %30 : vector<64x128xf32> to vector<64x128xbf16>
    %cst_14 = arith.constant dense<0.000000e+00> : vector<128x128xf32>
    %33 = tpu.matmul %31, %32, %cst_14 {dimension_numbers = #tpu.dot_dimension_numbers<[1], [0], [0], [1], [0, 0, 1, 1], [], []>} : vector<128x64xbf16>, vector<64x128xbf16>, vector<128x128xf32> -> vector<128x128xf32>
    %c0_15 = arith.constant 0 : index
    %c0_16 = arith.constant 0 : index
    %34 = vector.load %arg7[%c0_15, %c0_16] : memref<128x1xf32, #tpu.memory_space<vmem>>, vector<128x1xf32>
    %35 = vector.broadcast %34 : vector<128x1xf32> to vector<128x128xf32>
    %36 = arith.addf %33, %35 : vector<128x128xf32>
    %37 = arith.negf %36 : vector<128x128xf32>
    %38 = math.exp %37 : vector<128x128xf32>
    %cst_17 = arith.constant 1.000000e+00 : f32
    %39 = vector.broadcast %cst_17 : f32 to vector<128x128xf32>
    %40 = arith.addf %39, %38 : vector<128x128xf32>
    %41 = arith.divf %39, %40 : vector<128x128xf32>
    %42 = arith.mulf %36, %41 : vector<128x128xf32>
    %c0_18 = arith.constant 0 : index
    %c0_19 = arith.constant 0 : index
    %43 = vector.load %arg8[%c0_18, %c0_19] : memref<64x128xbf16, #tpu.memory_space<vmem>>, vector<64x128xbf16>
    %44 = arith.truncf %42 : vector<128x128xf32> to vector<128x128xbf16>
    %cst_20 = arith.constant dense<0.000000e+00> : vector<64x128xf32>
    %45 = tpu.matmul %43, %44, %cst_20 {dimension_numbers = #tpu.dot_dimension_numbers<[1], [0], [0], [1], [0, 0, 1, 1], [], []>} : vector<64x128xbf16>, vector<128x128xbf16>, vector<64x128xf32> -> vector<64x128xf32>
    %c0_21 = arith.constant 0 : index
    %c0_22 = arith.constant 0 : index
    %46 = vector.load %arg9[%c0_21, %c0_22] : memref<64x1xf32, #tpu.memory_space<vmem>>, vector<64x1xf32>
    %47 = vector.broadcast %46 : vector<64x1xf32> to vector<64x128xf32>
    %48 = arith.addf %45, %47 : vector<64x128xf32>
    %49 = arith.negf %48 : vector<64x128xf32>
    %50 = math.exp %49 : vector<64x128xf32>
    %cst_23 = arith.constant 1.000000e+00 : f32
    %51 = vector.broadcast %cst_23 : f32 to vector<64x128xf32>
    %52 = arith.addf %51, %50 : vector<64x128xf32>
    %53 = arith.divf %51, %52 : vector<64x128xf32>
    %54 = arith.mulf %48, %53 : vector<64x128xf32>
    %c0_24 = arith.constant 0 : index
    %c0_25 = arith.constant 0 : index
    %55 = vector.load %arg10[%c0_24, %c0_25] : memref<2x64xf32, #tpu.memory_space<vmem>>, vector<2x64xf32>
    %cst_26 = arith.constant dense<0.000000e+00> : vector<2x128xf32>
    %56 = tpu.matmul %55, %54, %cst_26 {dimension_numbers = #tpu.dot_dimension_numbers<[1], [0], [0], [1], [0, 0, 1, 1], [], []>} : vector<2x64xf32>, vector<64x128xf32>, vector<2x128xf32> -> vector<2x128xf32>
    %c0_27 = arith.constant 0 : index
    %c0_28 = arith.constant 0 : index
    %57 = vector.load %arg11[%c0_27, %c0_28] : memref<2x1xf32, #tpu.memory_space<vmem>>, vector<2x1xf32>
    %58 = vector.broadcast %57 : vector<2x1xf32> to vector<2x128xf32>
    %59 = arith.addf %56, %58 : vector<2x128xf32>
    %c0_29 = arith.constant 0 : index
    %c0_30 = arith.constant 0 : index
    %60 = vector.load %arg12[%c0_29, %c0_30] : memref<2x128xf32, #tpu.memory_space<vmem>>, vector<2x128xf32>
    tpu.vector_store %arg12[%c0_29, %c0_30], %59 {strides = array<i32>} : memref<2x128xf32, #tpu.memory_space<vmem>>, vector<2x128xf32>,
    return
  }
  func.func @transform_0(%arg0: i32) -> (i32, i32) {
    %c0_i32 = arith.constant 0 : i32
    %c0_i32_0 = arith.constant 0 : i32
    return %c0_i32, %arg0 : i32, i32
  }
  func.func @transform_1(%arg0: i32) -> (i32, i32) {
    %c0_i32 = arith.constant 0 : i32
    %c0_i32_0 = arith.constant 0 : i32
    return %c0_i32, %arg0 : i32, i32
  }
  func.func @transform_2(%arg0: i32) -> (i32, i32) {
    %c0_i32 = arith.constant 0 : i32
    %c0_i32_0 = arith.constant 0 : i32
    %c0_i32_1 = arith.constant 0 : i32
    return %c0_i32, %c0_i32_0 : i32, i32
  }
  func.func @transform_3(%arg0: i32) -> (i32, i32) {
    %c0_i32 = arith.constant 0 : i32
    %c0_i32_0 = arith.constant 0 : i32
    %c0_i32_1 = arith.constant 0 : i32
    return %c0_i32, %c0_i32_0 : i32, i32
  }
  func.func @transform_4(%arg0: i32) -> (i32, i32) {
    %c0_i32 = arith.constant 0 : i32
    %c0_i32_0 = arith.constant 0 : i32
    %c0_i32_1 = arith.constant 0 : i32
    return %c0_i32, %c0_i32_0 : i32, i32
  }
  func.func @transform_5(%arg0: i32) -> (i32, i32) {
    %c0_i32 = arith.constant 0 : i32
    %c0_i32_0 = arith.constant 0 : i32
    %c0_i32_1 = arith.constant 0 : i32
    return %c0_i32, %c0_i32_0 : i32, i32
  }
  func.func @transform_6(%arg0: i32) -> (i32, i32) {
    %c0_i32 = arith.constant 0 : i32
    %c0_i32_0 = arith.constant 0 : i32
    %c0_i32_1 = arith.constant 0 : i32
    return %c0_i32, %c0_i32_0 : i32, i32
  }
  func.func @transform_7(%arg0: i32) -> (i32, i32) {
    %c0_i32 = arith.constant 0 : i32
    %c0_i32_0 = arith.constant 0 : i32
    %c0_i32_1 = arith.constant 0 : i32
    return %c0_i32, %c0_i32_0 : i32, i32
  }
  func.func @transform_8(%arg0: i32) -> (i32, i32) {
    %c0_i32 = arith.constant 0 : i32
    %c0_i32_0 = arith.constant 0 : i32
    %c0_i32_1 = arith.constant 0 : i32
    return %c0_i32, %c0_i32_0 : i32, i32
  }
  func.func @transform_9(%arg0: i32) -> (i32, i32) {
    %c0_i32 = arith.constant 0 : i32
    %c0_i32_0 = arith.constant 0 : i32
    %c0_i32_1 = arith.constant 0 : i32
    return %c0_i32, %c0_i32_0 : i32, i32
  }
  func.func @transform_10(%arg0: i32) -> (i32, i32) {
    %c0_i32 = arith.constant 0 : i32
    %c0_i32_0 = arith.constant 0 : i32
    %c0_i32_1 = arith.constant 0 : i32
    return %c0_i32, %c0_i32_0 : i32, i32
  }
  func.func @transform_11(%arg0: i32) -> (i32, i32) {
    %c0_i32 = arith.constant 0 : i32
    %c0_i32_0 = arith.constant 0 : i32
    return %c0_i32, %arg0 : i32, i32
  }
}

</mosaic_0001>

<bundles_post_ra>
// kernel: tpu_custom_call.1
= control target key start
LH: loop header
LB: loop body
LE: loop exit
PB: predicated region body
PF: predicated region fallthrough
CT: control target
= control target key end

     0   :  { %s2366_s0 = inlined_call_operand.vmem [shape: f32[2,256], index: 0, kind: input, shape index: {}]   ;;  %s2367_s1 = inlined_call_operand.vmem [shape: f32[1,256], index: 1, kind: input, shape index: {}]   ;;  %s2368_s2 = inlined_call_operand.vmem [shape: f32[64,2], index: 2, kind: input, shape index: {}]   ;;  %s2369_s3 = inlined_call_operand.vmem [shape: f32[64,1], index: 3, kind: input, shape index: {}]   ;;  %s2370_s4 = inlined_call_operand.vmem [shape: f32[64,1], index: 4, kind: input, shape index: {}]   ;;  %s2371_s5 = inlined_call_operand.vmem [shape: bf16[128,64], index: 5, kind: input, shape index: {}]   ;;  %s2372_s6 = inlined_call_operand.vmem [shape: f32[128,1], index: 6, kind: input, shape index: {}]   ;;  %s2373_s7 = inlined_call_operand.vmem [shape: bf16[64,128], index: 7, kind: input, shape index: {}]   ;;  %s2374_s8 = inlined_call_operand.vmem [shape: f32[64,1], index: 8, kind: input, shape index: {}]   ;;  %s2375_s9 = inlined_call_operand.vmem [shape: f32[2,64], index: 9, kind: input, shape index: {}]   ;;  %s2376_s10 = inlined_call_operand.vmem [shape: f32[2,1], index: 10, kind: input, shape index: {}]   ;;  %s2377_s11 = inlined_call_operand.hbm [shape: f32[2,256], index: 11, kind: output, shape index: {}]  }
   0x1   :  { %2378 = sst [smem:[#allocation5_spill]] %s2366_s0 }
   0x2   :  { %16 = vsyncpa [#allocation3], 0 }
   0x3   :  { %18 = vsyncpa [#allocation3 + $0x1], 0  ;;  %s1956_s17 = smov 0   ;;  %s1958_s18 = smov 0  }
   0x4   :  { %s1960_s19 = smov 0   ;;  %s1962_s20 = smov 0  }
   0x5 LB: > { %s1977_s21 = sadd.s32 4294967295, %s1888_s20   ;;  %s1457_s22 = sadd.s32 4294967294, %s1888_s20   ;;  %s1888_s20 = sphi %s1962_s20, %s2385_s20   ;;  %s1884_s19 = sphi %s1960_s19, %s2384_s19   ;;  %s1880_s18 = sphi %s1958_s18, %s2383_s18   ;;  %s1876_s17 = sphi %s1956_s17, %s2382_s17  }
   0x6   : > { %s1981_s23 = sadd.s32 1, %s1888_s20   ;;  %s272_s24 = sadd.s32 1, %s1884_s19 }
   0x7   : > { %s269_s25 = ssub.s32 %s1888_s20, %s1981_s23  ;;  %p282_p0 = scmp.ne.s32.totalorder %s1884_s19, %s1880_s18 }
   0x8   : > { %p270_p1 = scmp.eq.s32.totalorder %s269_s25, 0  ;;  %p283_p2 = scmp.eq.s32.totalorder %s1977_s21, 1 }
   0x9   : > { %p288_p3 = scmp.ne.s32.totalorder %s1880_s18, %s1876_s17  ;;  %p289_p4 = scmp.eq.s32.totalorder %s1457_s22, 1 }
   0xa   : > { %s1992_s26 = scalar_select %p270_p1, %s1884_s19, %s272_s24  }
   0xb   : > { %p1994_p5 = por %p283_p2, %p282_p0  ;;  %p1998_p6 = por %p289_p4, %p288_p3 }
   0xc   : > { %p1460_p7 = scmp.ge.s32.totalorder %s1888_s20, 1  ;;  %p347_p8 = scmp.lt.s32.totalorder %s1888_s20, 3 }
   0xe   : > { %p348_p9 = pnand %p1460_p7, %p347_p8 }
   0xf   : > { %v403_v0 = vld [vmem:[%s2368_s2 + $0x10] sm:$0xff] (!%p348_p9)  ;;  %v401_v1 = vld [vmem:[%s2368_s2] sm:$0xff] (!%p348_p9)  ;;  %v1890_v2 = vmov (!%p348_p9), 1   ;;  %v402_v4 = vld [vmem:[%s2368_s2 + $0x8] sm:$0xff] (!%p348_p9)  ;;  %v1891_v7 = vmov (!%p348_p9), 0   ;;  %vm851_vm0 = vcmask (!%p348_p9), 523264   ;;  %v449_v56 = vlaneseq (!%p348_p9) }
  0x10   : > { %351 = sbr.rel (%p348_p9) target bundleno = 1030 (0x406), region = 64  ;;  %1678 = vset.pattern.permute.xlu0 (!%p348_p9), %v1890_v2  ;;  %1676 = vset.pattern.permute.xlu1 (!%p348_p9), %v1890_v2  ;;  %v405_v3 = vld [vmem:[%s2368_s2 + $0x20] sm:$0xff] (!%p348_p9)  ;;  %v407_v5 = vld [vmem:[%s2368_s2 + $0x30] sm:$0xff] (!%p348_p9)  ;;  %v514_v6 = vld [vmem:[%s2369_s3 + $0x8] sm:$0xff] (!%p348_p9)  ;;  %p389_p10 = scmp.lt.s32.totalorder (!%p348_p9), %s1977_s21, 1  ;;  %vm1893_vm1 = vmmov (!%p348_p9), 0  }
  0x11   : > { %470 = vperm.xlu0 (!%p348_p9), %1678, %v403_v0   ;;  %462 = vperm.xlu1 (!%p348_p9), %1676, %v401_v1   ;;  %v404_v8 = vld [vmem:[%s2368_s2 + $0x18] sm:$0xff] (!%p348_p9)  ;;  %v513_v9 = vld [vmem:[%s2369_s3] sm:$0xff] (!%p348_p9)  ;;  %v515_v10 = vld [vmem:[%s2369_s3 + $0x10] sm:$0xff] (!%p348_p9)  ;;  %v450_v60 = vshrl.u32 (!%p348_p9), %v449_v56, 7  ;;  %s2381_s0 = sld [smem:[#allocation5_spill]] (!%p348_p9)  ;;  %s386_s12 = sand.u32 (!%p348_p9), 1, %s1880_s18  }
  0x12   : > { %v583_v11 = vld [vmem:[%s2370_s4] sm:$0xff] (!%p348_p9)  ;;  %v516_v12 = vld [vmem:[%s2369_s3 + $0x18] sm:$0xff] (!%p348_p9)  ;;  %v584_v13 = vld [vmem:[%s2370_s4 + $0x8] sm:$0xff] (!%p348_p9) }
  0x13   : > { %v406_v14 = vld [vmem:[%s2368_s2 + $0x28] sm:$0xff] (!%p348_p9)  ;;  %v520_v16 = vld [vmem:[%s2369_s3 + $0x38] sm:$0xff] (!%p348_p9)  ;;  %v517_v17 = vld [vmem:[%s2369_s3 + $0x20] sm:$0xff] (!%p348_p9) }
  0x14   : > { %v518_v15 = vld [vmem:[%s2369_s3 + $0x28] sm:$0xff] (!%p348_p9)  ;;  %v589_v18 = vld [vmem:[%s2370_s4 + $0x30] sm:$0xff] (!%p348_p9)  ;;  %v715_v20 = vld [vmem:[%s2372_s6] sm:$0xff] (!%p348_p9) }
  0x15   : > { %478 = vperm.xlu0 (!%p348_p9), %1678, %v405_v3   ;;  %466 = vperm.xlu1 (!%p348_p9), %1676, %v402_v4   ;;  %v585_v19 = vld [vmem:[%s2370_s4 + $0x10] sm:$0xff] (!%p348_p9)  ;;  %v586_v21 = vld [vmem:[%s2370_s4 + $0x18] sm:$0xff] (!%p348_p9)  ;;  %v719_v24 = vld [vmem:[%s2372_s6 + $0x20] sm:$0xff] (!%p348_p9) }
  0x16   : > { %v717_v22 = vld [vmem:[%s2372_s6 + $0x10] sm:$0xff] (!%p348_p9)  ;;  %v408_v23 = vld [vmem:[%s2368_s2 + $0x38] sm:$0xff] (!%p348_p9)  ;;  %v723_v27 = vld [vmem:[%s2372_s6 + $0x40] sm:$0xff] (!%p348_p9) }
  0x17   : > { %v721_v25 = vld [vmem:[%s2372_s6 + $0x30] sm:$0xff]  ;;  %v587_v28 = vld [vmem:[%s2370_s4 + $0x20] sm:$0xff]  ;;  %v588_v30 = vld [vmem:[%s2370_s4 + $0x28] sm:$0xff]  ;;  %s390_s29 = scalar_select %p389_p10, %s1977_s21, 1 }
  0x18   : > { %v519_v26 = vld [vmem:[%s2369_s3 + $0x30] sm:$0xff]  ;;  %v727_v31 = vld [vmem:[%s2372_s6 + $0x60] sm:$0xff]  ;;  %v590_v32 = vld [vmem:[%s2370_s4 + $0x38] sm:$0xff] }
  0x19   : > { %486 = vperm.xlu0 %1678, %v407_v5   ;;  %1677 = vset.pattern.permute.xlu1 %v1891_v7  ;;  %v725_v29 = vld [vmem:[%s2372_s6 + $0x50] sm:$0xff]  ;;  %v716_v34 = vld [vmem:[%s2372_s6 + $0x8] sm:$0xff]  ;;  %v1101_v35 = vld [vmem:[%s2374_s8] sm:$0xff]  ;;  %s395_s13 = scalar_lea.vmem %s2367_s1, %s390_s29  ;;  %s1462_s14 = sshll.u32 %s390_s29, 1 }
  0x1a   : > { %528 = vperm.xlu1 %1677, %v514_v6   ;;  %v729_v33 = vld [vmem:[%s2372_s6 + $0x70] sm:$0xff]  ;;  %v718_v36 = vld [vmem:[%s2372_s6 + $0x18] sm:$0xff]  ;;  %v720_v38 = vld [vmem:[%s2372_s6 + $0x28] sm:$0xff]  ;;  %s392_s22 = scalar_lea.vmem %s2381_s0, %s1462_s14  ;;  %s1517_s14 = sshll.u32 %s1977_s21, 5 }
  0x1b   : > { %v1103_v37 = vld [vmem:[%s2374_s8 + $0x10] sm:$0xff]  ;;  %v1105_v39 = vld [vmem:[%s2374_s8 + $0x20] sm:$0xff]  ;;  %v722_v40 = vld [vmem:[%s2372_s6 + $0x38] sm:$0xff]  ;;  %s2324_s25 = scalar_lea.hbm %s2377_s11, %s1517_s14  ;;  %s1376_s29 = scalar_lea.sflag [#allocation3], %s386_s12 }
  0x1c   : > { %v1107_v41 = vld [vmem:[%s2374_s8 + $0x30] sm:$0xff]  ;;  %v724_v42 = vld [vmem:[%s2372_s6 + $0x48] sm:$0xff]  ;;  %v1295_v43 = vld [vmem:[%s2376_s10] sm:$0x3]  ;;  %s1895_s21 = smov [#allocation2]  }
  0x1d   : > { %1683 = vset.pattern.permute.xlu0 %v1891_v7  ;;  %v726_v44 = vld [vmem:[%s2372_s6 + $0x58] sm:$0xff]  ;;  %v728_v45 = vld [vmem:[%s2372_s6 + $0x68] sm:$0xff]  ;;  %v1686_v48 = vld [vmem:[%s2371_s5] sm:$0xff]  }
  0x1e   : > { %411 = vperm.xlu0 %1683, %v401_v1   ;;  %426 = vperm.xlu1 %1677, %v404_v8   ;;  %v730_v46 = vld [vmem:[%s2372_s6 + $0x78] sm:$0xff]  ;;  %v1102_v47 = vld [vmem:[%s2374_s8 + $0x8] sm:$0xff]  ;;  %v398_v59 = vld [vmem:[%s395_s13] sm:$0x1]  ;;  %v451_v1 = vsub.s32 0, %v450_v60  ;;  %s1461_s13 = sshll.u32 %s386_s12, 1 }
  0x1f   : > { %1561 = vmatprep.mubr.msk.bf16.mxu0 %vm851_vm0, %v1686_v48  ;;  %v1104_v49 = vld [vmem:[%s2374_s8 + $0x18] sm:$0xff]  ;;  %v1106_v50 = vld [vmem:[%s2374_s8 + $0x28] sm:$0xff]  ;;  %v399_v61 = vmul.f32 8.517193, %v398_v59  ;;  %s388_s15 = scalar_lea.vmem [#allocation2], %s1461_s13  ;;  %s1830_s13 = sshll.u32 %s1895_s21, 4  ;;  %s1831_s13 = int_to_ptr.vmem [resolvable:$false] %s1830_s13 }
  0x20   : > { %v1108_v51 = vld [vmem:[%s2374_s8 + $0x38] sm:$0xff]  ;;  %s1389_s16 = sshll.u32 %s388_s15, 4  ;;  %s1832_s0 = scalar_lea.vmem %s1831_s13, 64  ;;  %s2326_s16 = int_to_ptr.vmem [resolvable:$true] %s1389_s16 }
  0x21   : > { %s1826_s30 = scalar_lea.vmem %s2326_s16, 32  ;;  %p1833_p0 = scmp.lt.s32.totalorder %s2326_s16, %s1831_s13 }
  0x22   : > { %416 = vperm.xlu0 %1683, %v402_v4   ;;  %1679 = vset.pattern.permute.xlu1 %v1890_v2  ;;  %p1827_p11 = scmp.ne.s32.totalorder %s2326_s16, %s1826_s30  ;;  %p1834_p1 = scmp.lt.s32.totalorder %s1832_s0, %s1826_s30 }
  0x23   : > { %474 = vperm.xlu1 %1679, %v404_v8  }
  0x24   : > { %p1828_p12 = pnand %p1827_p11, %p1994_p5  ;;  %p1835_p2 = por %p1834_p1, %p1833_p0 }
  0x26   : > { %523 = vperm.xlu0 %1683, %v513_v9   ;;  %p1829_p13 = pneg %p1828_p12 }
  0x27   : > { %1680 = vset.pattern.permute.xlu1 %v1891_v7 }
  0x28   : > { %533 = vperm.xlu1 %1680, %v515_v10   ;;  %p1836_p3 = pnand %p1835_p2, %p1829_p13 }
  0x2a   : > { %421 = vperm.xlu0 %1683, %v403_v0   ;;  %v495_v0 = vsub.s32 1, %v450_v60 }
  0x2c   : > { %593 = vperm.xlu1 %1680, %v583_v11  }
  0x2e   : > { %538 = vperm.xlu0 %1683, %v516_v12  }
  0x30   : > { %598 = vperm.xlu1 %1680, %v584_v13  }
  0x32   : > { %431 = vperm.xlu0 %1683, %v405_v3   ;;  %v400_v3 = vadd.f32 -4.6051702, %v399_v61 }
  0x34   : > { %436 = vperm.xlu1 %1680, %v406_v14   ;;  %v2171_v8 = vrot.slane %v400_v3, %v451_v1 }
  0x36   : > { %548 = vperm.xlu0 %1683, %v518_v15  }
  0x38   : > { %1681 = vset.pattern.permute.xlu1 %v1890_v2 }
  0x39   : > { %482 = vperm.xlu1 %1681, %v406_v14  }
  0x3a   : > { %441 = vperm.xlu0 %1683, %v407_v5  }
  0x3d   : > { %1682 = vset.pattern.permute.xlu1 %v1891_v7 }
  0x3e   : > { %558 = vperm.xlu0 %1683, %v520_v16   ;;  %543 = vperm.xlu1 %1682, %v517_v17  }
  0x42   : > { %623 = vperm.xlu0 %1683, %v589_v18   ;;  %603 = vperm.xlu1 %1682, %v585_v19  }
  0x46   : > { %733 = vperm.xlu0 %1683, %v715_v20   ;;  %608 = vperm.xlu1 %1682, %v586_v21  }
  0x4a   : > { %743 = vperm.xlu0 %1683, %v717_v22   ;;  %446 = vperm.xlu1 %1682, %v408_v23  }
  0x4e   : > { %753 = vperm.xlu0 %1683, %v719_v24   ;;  %1684 = vset.pattern.permute.xlu1 %v1890_v2  ;;  %v397_v2 = vld [vmem:[%s392_s22] sm:$0x3] }
  0x4f   : > { %490 = vperm.xlu1 %1684, %v408_v23   ;;  %v2167_v4 = vrot.slane %v397_v2, %v451_v1  ;;  %v2169_v6 = vrot.slane %v397_v2, %v495_v0 }
  0x52   : > { %763 = vperm.xlu0 %1683, %v721_v25  }
  0x53   : > { %1685 = vset.pattern.permute.xlu1 %v1891_v7 }
  0x54   : > { %553 = vperm.xlu1 %1685, %v519_v26  }
  0x56   : > { %773 = vperm.xlu0 %1683, %v723_v27  }
  0x58   : > { %613 = vperm.xlu1 %1685, %v587_v28  }
  0x5a   : > { %783 = vperm.xlu0 %1683, %v725_v29  }
  0x5c   : > { %618 = vperm.xlu1 %1685, %v588_v30  }
  0x5e   : > { %793 = vperm.xlu0 %1683, %v727_v31  }
  0x60   : > { %628 = vperm.xlu1 %1685, %v590_v32  }
  0x62   : > { %803 = vperm.xlu0 %1683, %v729_v33  }
  0x64   : > { %738 = vperm.xlu1 %1685, %v716_v34  }
  0x66   : > { %1111 = vperm.xlu0 %1683, %v1101_v35  }
  0x68   : > { %748 = vperm.xlu1 %1685, %v718_v36  }
  0x6a   : > { %1121 = vperm.xlu0 %1683, %v1103_v37  }
  0x6c   : > { %758 = vperm.xlu1 %1685, %v720_v38  }
  0x6e   : > { %1131 = vperm.xlu0 %1683, %v1105_v39  }
  0x70   : > { %768 = vperm.xlu1 %1685, %v722_v40  }
  0x72   : > { %1141 = vperm.xlu0 %1683, %v1107_v41  }
  0x74   : > { %778 = vperm.xlu1 %1685, %v724_v42  }
  0x76   : > { %1298 = vperm.xlu0 %1683, %v1295_v43  }
  0x78   : > { %788 = vperm.xlu1 %1685, %v726_v44  }
  0x7c   : > { %798 = vperm.xlu1 %1685, %v728_v45  }
  0x80   : > { %808 = vperm.xlu1 %1685, %v730_v46  }
  0x84   : > { %1116 = vperm.xlu1 %1685, %v1102_v47  }
  0x88   : > { %1126 = vperm.xlu1 %1685, %v1104_v49  }
  0x8c   : > { %1136 = vperm.xlu1 %1685, %v1106_v50  }
  0x90   : > { %1146 = vperm.xlu1 %1685, %v1108_v51   ;;  %v463_v52 = vpop.permute.xlu1 %462  ;;  %v471_v53 = vpop.permute.xlu0 %470 }
  0x91   : > { %v497_v11 = vmul.f32 %v2169_v6, %v463_v52  ;;  %v499_v29 = vmul.f32 %v2169_v6, %v471_v53 }
  0x94   : > { %v467_v54 = vpop.permute.xlu1 %466  ;;  %v2157_v55 = vpop.permute.xlu0 %478 }
  0x95   : > { %v498_v15 = vmul.f32 %v2169_v6, %v467_v54 }
  0x98   : > { %v2162_v57 = vpop.permute.xlu0 %486 }
  0x99   : > { %v529_v58 = vpop.permute.xlu1 %528 }
  0x9a   : > { %v568_v20 = vmul.f32 %v2171_v8, %v529_v58 }
  0x9d   : > { %v412_v62 = vpop.permute.xlu0 %411  ;;  %v427_v63 = vpop.permute.xlu1 %426 }
  0x9e   : > { %v453_v9 = vmul.f32 %v2167_v4, %v412_v62  ;;  %v456_v42 = vmul.f32 %v2167_v4, %v427_v63 }
  0xa0   : > { %v505_v16 = vadd.f32 %v497_v11, %v453_v9  ;;  %v503_v9 = vmul.f32 %v2169_v6, %v2162_v57 }
  0xa1   : > { %v417_v5 = vpop.permute.xlu0 %416 }
  0xa2   : > { %v475_v7 = vpop.permute.xlu1 %474  ;;  %v454_v12 = vmul.f32 %v2167_v4, %v417_v5 }
  0xa3   : > { %v500_v38 = vmul.f32 %v2169_v6, %v475_v7  ;;  %v501_v7 = vmul.f32 %v2169_v6, %v2157_v55 }
  0xa4   : > { %v506_v17 = vadd.f32 %v498_v15, %v454_v12 }
  0xa5   : > { %v524_v10 = vpop.permute.xlu0 %523  ;;  %v508_v46 = vadd.f32 %v500_v38, %v456_v42 }
  0xa6   : > { %v567_v13 = vmul.f32 %v2171_v8, %v524_v10  ;;  %v576_v23 = vadd.f32 %v568_v20, %v506_v17 }
  0xa7   : > { %v534_v14 = vpop.permute.xlu1 %533 }
  0xa8   : > { %v575_v18 = vadd.f32 %v567_v13, %v505_v16  ;;  %v569_v39 = vmul.f32 %v2171_v8, %v534_v14 }
  0xa9   : > { %v422_v27 = vpop.permute.xlu0 %421 }
  0xaa   : > { %v455_v30 = vmul.f32 %v2167_v4, %v422_v27 }
  0xab   : > { %v594_v19 = vpop.permute.xlu1 %593 }
  0xac   : > { %v631_v21 = vadd.f32 %v594_v19, %v575_v18  ;;  %v507_v35 = vadd.f32 %v499_v29, %v455_v30 }
  0xad   : > { %v539_v32 = vpop.permute.xlu0 %538 }
  0xae   : > { %v1463_v22 = vmul.f32 -1.442695, %v631_v21  ;;  %v570_v43 = vmul.f32 %v2171_v8, %v539_v32  ;;  %v577_v44 = vadd.f32 %v569_v39, %v507_v35 }
  0xaf   : > { %v599_v24 = vpop.permute.xlu1 %598 }
  0xb0   : > { %1698 = vpow2.f32 %v1463_v22  ;;  %v632_v25 = vadd.f32 %v599_v24, %v576_v23  ;;  %v578_v49 = vadd.f32 %v570_v43, %v508_v46 }
  0xb1   : > { %v432_v41 = vpop.permute.xlu0 %431 }
  0xb2   : > { %v1464_v26 = vmul.f32 -1.442695, %v632_v25  ;;  %v457_v1 = vmul.f32 %v2167_v4, %v432_v41 }
  0xb3   : > { %v437_v28 = vpop.permute.xlu1 %436 }
  0xb4   : > { %1700 = vpow2.f32 %v1464_v26  ;;  %v509_v14 = vadd.f32 %v501_v7, %v457_v1  ;;  %v458_v15 = vmul.f32 %v2167_v4, %v437_v28  ;;  %v1691_v1 = vld [vmem:[%s2371_s5 + $0x28] sm:$0xff]  }
  0xb5   : > { %v549_v50 = vpop.permute.xlu0 %548 }
  0xb6   : > { %v572_v18 = vmul.f32 %v2171_v8, %v549_v50 }
  0xb8   : > { %v483_v31 = vpop.permute.xlu1 %482 }
  0xb9   : > { %v442_v59 = vpop.permute.xlu0 %441  ;;  %v502_v10 = vmul.f32 %v2169_v6, %v483_v31 }
  0xba   : > { %v1699_v33 = vpop.eup %1698  ;;  %v459_v2 = vmul.f32 %v2167_v4, %v442_v59 }
  0xbb   : > { %v663_v34 = vadd.f32 1.0, %v1699_v33  ;;  %v510_v55 = vadd.f32 %v502_v10, %v458_v15 }
  0xbc   : > { %v511_v16 = vadd.f32 %v503_v9, %v459_v2  ;;  %v1692_v2 = vld [vmem:[%s2371_s5 + $0x30] sm:$0xff]  }
  0xbd   : > { %v544_v36 = vpop.permute.xlu1 %543  ;;  %1702 = vrcp.f32 %v663_v34  ;;  %v559_v3 = vpop.permute.xlu0 %558  ;;  %v580_v30 = vadd.f32 %v572_v18, %v510_v55 }
  0xbe   : > { %v1701_v37 = vpop.eup %1700  ;;  %v571_v11 = vmul.f32 %v2171_v8, %v544_v36  ;;  %v574_v32 = vmul.f32 %v2171_v8, %v559_v3  ;;  %v1693_v3 = vld [vmem:[%s2371_s5 + $0x38] sm:$0xff]  }
  0xbf   : > { %v664_v40 = vadd.f32 1.0, %v1701_v37 }
  0xc1   : > { %1704 = vrcp.f32 %v664_v40  ;;  %v604_v45 = vpop.permute.xlu1 %603  ;;  %v624_v22 = vpop.permute.xlu0 %623 }
  0xc2   : > { %v2185_v47 = vadd.f32 %v604_v45, %v577_v44 }
  0xc4   : > { %v1465_v48 = vmul.f32 -1.442695, %v2185_v47 }
  0xc5   : > { %v609_v51 = vpop.permute.xlu1 %608  ;;  %v734_v7 = vpop.permute.xlu0 %733 }
  0xc6   : > { %1706 = vpow2.f32 %v1465_v48  ;;  %v634_v52 = vadd.f32 %v609_v51, %v578_v49 }
  0xc7   : > { %v1703_v54 = vpop.eup %1702 }
  0xc8   : > { %v1466_v53 = vmul.f32 -1.442695, %v634_v52  ;;  %v687_v60 = vmul.f32 %v1703_v54, %v631_v21  ;;  %v579_v21 = vadd.f32 %v571_v11, %v509_v14 }
  0xc9   : > { %v447_v56 = vpop.permute.xlu1 %446  ;;  %v744_v10 = vpop.permute.xlu0 %743 }
  0xca   : > { %1708 = vpow2.f32 %v1466_v53  ;;  %v460_v24 = vmul.f32 %v2167_v4, %v447_v56 }
  0xcb   : > { %v1705_v58 = vpop.eup %1704 }
  0xcc   : > { %v688_v61 = vmul.f32 %v1705_v58, %v632_v25 }
  0xce   : > { %v491_v62 = vpop.permute.xlu1 %490  ;;  %v711_v63 = vpack.c.bf16 %v688_v61, %v687_v60  ;;  %v1687_v61 = vld [vmem:[%s2371_s5 + $0x8] sm:$0xff]  }
  0xcf   : > { %v504_v20 = vmul.f32 %v2169_v6, %v491_v62  ;;  %v1688_v62 = vld [vmem:[%s2371_s5 + $0x10] sm:$0xff]  }
  0xd0   : > { %v1707_v0 = vpop.eup %1706  ;;  %1553 = vmatprep.subr.bf16.mxu0 %v711_v63 }
  0xd1   : > { %v665_v5 = vadd.f32 1.0, %v1707_v0  ;;  %1554 = vmatpush3.bf16.msra.mxu0 %v711_v63  ;;  %v512_v27 = vadd.f32 %v504_v20, %v460_v24  ;;  %v1689_v63 = vld [vmem:[%s2371_s5 + $0x18] sm:$0xff]   ;;  %v1690_v0 = vld [vmem:[%s2371_s5 + $0x20] sm:$0xff]  }
  0xd3   : > { %v554_v12 = vpop.permute.xlu1 %553  ;;  %1710 = vrcp.f32 %v665_v5  ;;  %v582_v34 = vadd.f32 %v574_v32, %v512_v27  ;;  %v1694_v5 = vld [vmem:[%s2373_s7] sm:$0xff]  }
  0xd4   : > { %v1709_v13 = vpop.eup %1708  ;;  %v573_v17 = vmul.f32 %v2171_v8, %v554_v12  ;;  %1593 = vmatprep.mubr.bf16.mxu1 %v1694_v5  ;;  %v754_v12 = vpop.permute.xlu0 %753 }
  0xd5   : > { %v666_v19 = vadd.f32 1.0, %v1709_v13 }
  0xd6   : > { %v581_v57 = vadd.f32 %v573_v17, %v511_v16 }
  0xd7   : > { %1712 = vrcp.f32 %v666_v19  ;;  %v614_v23 = vpop.permute.xlu1 %613 }
  0xd8   : > { %v637_v25 = vadd.f32 %v624_v22, %v581_v57  ;;  %v635_v26 = vadd.f32 %v614_v23, %v579_v21  ;;  %v764_v14 = vpop.permute.xlu0 %763 }
  0xda   : > { %v1469_v28 = vmul.f32 -1.442695, %v637_v25  ;;  %v1467_v29 = vmul.f32 -1.442695, %v635_v26 }
  0xdb   : > { %v619_v31 = vpop.permute.xlu1 %618 }
  0xdc   : > { %v636_v33 = vadd.f32 %v619_v31, %v580_v30  ;;  %1714 = vpow2.f32 %v1467_v29 }
  0xdd   : > { %1716 = vpow2.f32 %v1469_v28  ;;  %v1711_v35 = vpop.eup %1710 }
  0xde   : > { %v1468_v6 = vmul.f32 -1.442695, %v636_v33  ;;  %v689_v4 = vmul.f32 %v1711_v35, %v2185_v47 }
  0xdf   : > { %v629_v36 = vpop.permute.xlu1 %628 }
  0xe0   : > { %1718 = vpow2.f32 %v1468_v6  ;;  %v638_v37 = vadd.f32 %v629_v36, %v582_v34 }
  0xe1   : > { %v1713_v38 = vpop.eup %1712 }
  0xe2   : > { %v690_v39 = vmul.f32 %v1713_v38, %v634_v52  ;;  %v1470_v40 = vmul.f32 -1.442695, %v638_v37 }
  0xe3   : > { %v739_v9 = vpop.permute.xlu1 %738 }
  0xe4   : > { %1720 = vpow2.f32 %v1470_v40  ;;  %v712_v41 = vpack.c.bf16 %v690_v39, %v689_v4 }
  0xe6   : > { %1555 = vmatprep.subr.bf16.mxu0 %v712_v41  ;;  %v1715_v42 = vpop.eup %1714 }
  0xe7   : > { %1556 = vmatpush3.bf16.msra.mxu0 %v712_v41  ;;  %v1717_v8 = vpop.eup %1716  ;;  %v667_v43 = vadd.f32 1.0, %v1715_v42  ;;  %v749_v11 = vpop.permute.xlu1 %748 }
  0xe8   : > { %v669_v45 = vadd.f32 1.0, %v1717_v8 }
  0xe9   : > { %1722 = vrcp.f32 %v667_v43 }
  0xea   : > { %v1719_v44 = vpop.eup %1718 }
  0xeb   : > { %v668_v46 = vadd.f32 1.0, %v1719_v44  ;;  %v759_v13 = vpop.permute.xlu1 %758 }
  0xed   : > { %1724 = vrcp.f32 %v668_v46 }
  0xee   : > { %v1721_v48 = vpop.eup %1720  ;;  %1726 = vrcp.f32 %v669_v45 }
  0xef   : > { %v670_v49 = vadd.f32 1.0, %v1721_v48  ;;  %v769_v18 = vpop.permute.xlu1 %768 }
  0xf1   : > { %1728 = vrcp.f32 %v670_v49 }
  0xf3   : > { %v1723_v50 = vpop.eup %1722  ;;  %v779_v27 = vpop.permute.xlu1 %778 }
  0xf4   : > { %v691_v51 = vmul.f32 %v1723_v50, %v635_v26 }
  0xf7   : > { %v1725_v47 = vpop.eup %1724  ;;  %v789_v4 = vpop.permute.xlu1 %788 }
  0xf8   : > { %v692_v52 = vmul.f32 %v1725_v47, %v636_v33  ;;  %v1727_v53 = vpop.eup %1726 }
  0xf9   : > { %v693_v59 = vmul.f32 %v1727_v53, %v637_v25  ;;  %v774_v25 = vpop.permute.xlu0 %773 }
  0xfa   : > { %v713_v54 = vpack.c.bf16 %v692_v52, %v691_v51 }
  0xfb   : > { %v1729_v56 = vpop.eup %1728 }
  0xfc   : > { %v694_v58 = vmul.f32 %v1729_v56, %v638_v37  ;;  %1557 = vmatprep.subr.bf16.mxu0 %v713_v54 }
  0xfd   : > { %1558 = vmatpush3.bf16.msra.mxu0 %v713_v54  ;;  %v784_v35 = vpop.permute.xlu0 %783 }
  0xfe   : > { %v714_v60 = vpack.c.bf16 %v694_v58, %v693_v59  ;;  %v799_v58 = vpop.permute.xlu1 %798 }
 0x100   : > { %1559 = vmatprep.subr.bf16.mxu0 %v714_v60 }
 0x101   : > { %1560 = vmatpush3.bf16.msra.mxu0 %v714_v60  ;;  %v794_v49 = vpop.permute.xlu0 %793 }
 0x104   : > { %1562 = vmatmul.mubr.msk.bf16.vlgmr.msra.gmra.mrb[0].mxu0 %vm851_vm0, %v1687_v61 }
 0x105   : > { %1565 = vmatprep.mubr.msk.bf16.mxu0 %vm851_vm0, %v1688_v62 }
 0x10c   : > { %1566 = vmatmul.mubr.msk.bf16.gmra.mrb[4].mxu0 %vm851_vm0, %v1689_v63 }
 0x10d   : > { %1569 = vmatprep.mubr.msk.bf16.mxu0 %vm851_vm0, %v1690_v0 }
 0x114   : > { %1570 = vmatmul.mubr.msk.bf16.gmra.mrb[8].mxu0 %vm851_vm0, %v1691_v1  ;;  %v804_v1 = vpop.permute.xlu0 %803 }
 0x115   : > { %1573 = vmatprep.mubr.msk.bf16.mxu0 %vm851_vm0, %v1692_v2 }
 0x11c   : > { %1574 = vmatmul.mubr.msk.bf16.gmra.mrb[12].mxu0 %vm851_vm0, %v1693_v3 }
 0x1d7   : > { %v1563_v15 = vpop.f32.mrb[0].mxu0 }
 0x1d8   : > { %v2234_v16 = vadd.f32 %v1563_v15, %v744_v10  ;;  %v910_v17 = vpop.f32.mrb[1].mxu0 }
 0x1d9   : > { %v2236_v19 = vadd.f32 %v910_v17, %v734_v7  ;;  %v1564_v55 = vpop.f32.mrb[2].mxu0 }
 0x1da   : > { %v1489_v20 = vmul.f32 -1.442695, %v2234_v16  ;;  %v2239_v57 = vadd.f32 %v1564_v55, %v749_v11  ;;  %v913_v21 = vpop.f32.mrb[3].mxu0 }
 0x1db   : > { %v1487_v22 = vmul.f32 -1.442695, %v2236_v19  ;;  %v2242_v23 = vadd.f32 %v913_v21, %v739_v9 }
 0x1dc   : > { %1730 = vpow2.f32 %v1489_v20  ;;  %v1490_v24 = vmul.f32 -1.442695, %v2239_v57 }
 0x1dd   : > { %1732 = vpow2.f32 %v1487_v22  ;;  %v1488_v26 = vmul.f32 -1.442695, %v2242_v23 }
 0x1de   : > { %1734 = vpow2.f32 %v1490_v24 }
 0x1df   : > { %1736 = vpow2.f32 %v1488_v26  ;;  %v1567_v28 = vpop.f32.mrb[4].mxu0 }
 0x1e0   : > { %v2246_v29 = vadd.f32 %v1567_v28, %v764_v14  ;;  %v926_v30 = vpop.f32.mrb[5].mxu0 }
 0x1e1   : > { %v2248_v31 = vadd.f32 %v926_v30, %v754_v12  ;;  %v1568_v32 = vpop.f32.mrb[6].mxu0  ;;  %v809_v12 = vpop.permute.xlu1 %808 }
 0x1e2   : > { %v1493_v33 = vmul.f32 -1.442695, %v2246_v29  ;;  %v2251_v6 = vadd.f32 %v1568_v32, %v769_v18  ;;  %v929_v34 = vpop.f32.mrb[7].mxu0 }
 0x1e3   : > { %v1491_v36 = vmul.f32 -1.442695, %v2248_v31  ;;  %v2254_v37 = vadd.f32 %v929_v34, %v759_v13 }
 0x1e4   : > { %1738 = vpow2.f32 %v1493_v33  ;;  %v1494_v38 = vmul.f32 -1.442695, %v2251_v6 }
 0x1e5   : > { %1740 = vpow2.f32 %v1491_v36  ;;  %v1492_v39 = vmul.f32 -1.442695, %v2254_v37 }
 0x1e6   : > { %v1731_v40 = vpop.eup %1730  ;;  %1742 = vpow2.f32 %v1494_v38 }
 0x1e7   : > { %v1733_v41 = vpop.eup %1732  ;;  %v1023_v42 = vadd.f32 1.0, %v1731_v40  ;;  %1744 = vpow2.f32 %v1492_v39  ;;  %v1571_v8 = vpop.f32.mrb[8].mxu0 }
 0x1e8   : > { %v1735_v43 = vpop.eup %1734  ;;  %v1021_v44 = vadd.f32 1.0, %v1733_v41  ;;  %v2258_v45 = vadd.f32 %v1571_v8, %v784_v35  ;;  %v942_v46 = vpop.f32.mrb[9].mxu0 }
 0x1e9   : > { %v1737_v48 = vpop.eup %1736  ;;  %1746 = vrcp.f32 %v1023_v42  ;;  %v1024_v50 = vadd.f32 1.0, %v1735_v43  ;;  %v2260_v47 = vadd.f32 %v942_v46, %v774_v25  ;;  %v1572_v51 = vpop.f32.mrb[10].mxu0 }
 0x1ea   : > { %1748 = vrcp.f32 %v1021_v44  ;;  %v1022_v52 = vadd.f32 1.0, %v1737_v48  ;;  %v1497_v53 = vmul.f32 -1.442695, %v2258_v45  ;;  %v2263_v54 = vadd.f32 %v1572_v51, %v789_v4  ;;  %v945_v56 = vpop.f32.mrb[11].mxu0 }
 0x1eb   : > { %1750 = vrcp.f32 %v1024_v50  ;;  %v1495_v59 = vmul.f32 -1.442695, %v2260_v47  ;;  %v2266_v60 = vadd.f32 %v945_v56, %v779_v27 }
 0x1ec   : > { %1752 = vrcp.f32 %v1022_v52  ;;  %v1498_v61 = vmul.f32 -1.442695, %v2263_v54 }
 0x1ed   : > { %1754 = vpow2.f32 %v1497_v53  ;;  %v1496_v62 = vmul.f32 -1.442695, %v2266_v60 }
 0x1ee   : > { %v1739_v63 = vpop.eup %1738  ;;  %1756 = vpow2.f32 %v1495_v59 }
 0x1ef   : > { %v1741_v0 = vpop.eup %1740  ;;  %v1027_v2 = vadd.f32 1.0, %v1739_v63  ;;  %1758 = vpow2.f32 %v1498_v61  ;;  %v1575_v3 = vpop.f32.mrb[12].mxu0 }
 0x1f0   : > { %v1743_v5 = vpop.eup %1742  ;;  %v1025_v7 = vadd.f32 1.0, %v1741_v0  ;;  %1760 = vpow2.f32 %v1496_v62  ;;  %v2270_v9 = vadd.f32 %v1575_v3, %v804_v1  ;;  %v958_v10 = vpop.f32.mrb[13].mxu0 }
 0x1f1   : > { %v1745_v11 = vpop.eup %1744  ;;  %1762 = vrcp.f32 %v1027_v2  ;;  %v1028_v13 = vadd.f32 1.0, %v1743_v5  ;;  %v2272_v14 = vadd.f32 %v958_v10, %v794_v49  ;;  %v1576_v15 = vpop.f32.mrb[14].mxu0 }
 0x1f2   : > { %1764 = vrcp.f32 %v1025_v7  ;;  %v1026_v17 = vadd.f32 1.0, %v1745_v11  ;;  %v1501_v18 = vmul.f32 -1.442695, %v2270_v9  ;;  %v2275_v55 = vadd.f32 %v1576_v15, %v809_v12  ;;  %v961_v20 = vpop.f32.mrb[15].mxu0 }
 0x1f3   : > { %v1747_v21 = vpop.eup %1746  ;;  %1766 = vrcp.f32 %v1028_v13  ;;  %v1499_v22 = vmul.f32 -1.442695, %v2272_v14  ;;  %v2278_v24 = vadd.f32 %v961_v20, %v799_v58  ;;  %v1695_v20 = vld [vmem:[%s2373_s7 + $0x8] sm:$0xff]  }
 0x1f4   : > { %v1749_v25 = vpop.eup %1748  ;;  %1768 = vrcp.f32 %v1026_v17  ;;  %v1502_v26 = vmul.f32 -1.442695, %v2275_v55  ;;  %v1071_v32 = vmul.f32 %v1747_v21, %v2234_v16  ;;  %v1894_v21 = vmov 0.0  }
 0x1f5   : > { %v1751_v27 = vpop.eup %1750  ;;  %1770 = vpow2.f32 %v1501_v18  ;;  %v1500_v28 = vmul.f32 -1.442695, %v2278_v24  ;;  %v1069_v35 = vmul.f32 %v1749_v25, %v2236_v19  ;;  %1617 = vmatprep.mubr.msk.f32.mxu0 %vm1893_vm1, %v1894_v21 }
 0x1f6   : > { %v1753_v30 = vpop.eup %1752  ;;  %v1072_v33 = vmul.f32 %v1751_v27, %v2239_v57  ;;  %1772 = vpow2.f32 %v1499_v22  ;;  %v1112_v22 = vpop.permute.xlu0 %1111 }
 0x1f7   : > { %v1755_v34 = vpop.eup %1754  ;;  %v1070_v36 = vmul.f32 %v1753_v30, %v2242_v23  ;;  %1774 = vpow2.f32 %v1502_v26 }
 0x1f8   : > { %v1757_v38 = vpop.eup %1756  ;;  %v1031_v4 = vadd.f32 1.0, %v1755_v34  ;;  %1776 = vpow2.f32 %v1500_v28  ;;  %v1094_v39 = vpack.c.bf16 %v1072_v33, %v1071_v32 }
 0x1f9   : > { %v1759_v40 = vpop.eup %1758  ;;  %v1029_v41 = vadd.f32 1.0, %v1757_v38  ;;  %v1093_v42 = vpack.c.bf16 %v1070_v36, %v1069_v35 }
 0x1fa   : > { %v1761_v8 = vpop.eup %1760  ;;  %1778 = vrcp.f32 %v1031_v4  ;;  %v1032_v43 = vadd.f32 1.0, %v1759_v40  ;;  %v1122_v25 = vpop.permute.xlu0 %1121 }
 0x1fb   : > { %v1763_v16 = vpop.eup %1762  ;;  %1780 = vrcp.f32 %v1029_v41  ;;  %v1030_v57 = vadd.f32 1.0, %v1761_v8  ;;  %1577 = vmatprep.subr.bf16.mxu1 %v1093_v42 }
 0x1fc   : > { %v1765_v44 = vpop.eup %1764  ;;  %1782 = vrcp.f32 %v1032_v43  ;;  %1578 = vmatpush3.bf16.msra.mxu1 %v1093_v42  ;;  %v1075_v46 = vmul.f32 %v1763_v16, %v2246_v29 }
 0x1fd   : > { %v1767_v19 = vpop.eup %1766  ;;  %1784 = vrcp.f32 %v1030_v57  ;;  %1579 = vmatprep.subr.bf16.mxu1 %v1094_v39  ;;  %v1073_v50 = vmul.f32 %v1765_v44, %v2248_v31 }
 0x1fe   : > { %v1769_v23 = vpop.eup %1768  ;;  %v1076_v48 = vmul.f32 %v1767_v19, %v2251_v6  ;;  %v1132_v32 = vpop.permute.xlu0 %1131 }
 0x1ff   : > { %v1771_v49 = vpop.eup %1770  ;;  %v1074_v51 = vmul.f32 %v1769_v23, %v2254_v37 }
 0x200   : > { %v1773_v52 = vpop.eup %1772  ;;  %v1035_v53 = vadd.f32 1.0, %v1771_v49  ;;  %1580 = vmatpush3.bf16.msra.mxu1 %v1094_v39  ;;  %v1096_v56 = vpack.c.bf16 %v1076_v48, %v1075_v46 }
 0x201   : > { %v1775_v58 = vpop.eup %1774  ;;  %v1033_v59 = vadd.f32 1.0, %v1773_v52  ;;  %v1095_v61 = vpack.c.bf16 %v1074_v51, %v1073_v50 }
 0x202   : > { %v1777_v62 = vpop.eup %1776  ;;  %1786 = vrcp.f32 %v1035_v53  ;;  %v1036_v63 = vadd.f32 1.0, %v1775_v58  ;;  %v1142_v8 = vpop.permute.xlu0 %1141 }
 0x203   : > { %1788 = vrcp.f32 %v1033_v59  ;;  %v1034_v0 = vadd.f32 1.0, %v1777_v62  ;;  %1581 = vmatprep.subr.bf16.mxu1 %v1095_v61 }
 0x204   : > { %v1779_v29 = vpop.eup %1778  ;;  %1790 = vrcp.f32 %v1036_v63  ;;  %1582 = vmatpush3.bf16.msra.mxu1 %v1095_v61 }
 0x205   : > { %v1781_v6 = vpop.eup %1780  ;;  %1792 = vrcp.f32 %v1034_v0  ;;  %1583 = vmatprep.subr.bf16.mxu1 %v1096_v56  ;;  %v1079_v1 = vmul.f32 %v1779_v29, %v2258_v45 }
 0x206   : > { %v1783_v31 = vpop.eup %1782  ;;  %v1077_v3 = vmul.f32 %v1781_v6, %v2260_v47 }
 0x207   : > { %v1785_v37 = vpop.eup %1784  ;;  %v1080_v2 = vmul.f32 %v1783_v31, %v2263_v54 }
 0x208   : > { %v1078_v5 = vmul.f32 %v1785_v37, %v2266_v60  ;;  %1584 = vmatpush3.bf16.msra.mxu1 %v1096_v56 }
 0x209   : > { %v1098_v7 = vpack.c.bf16 %v1080_v2, %v1079_v1 }
 0x20a   : > { %v1097_v10 = vpack.c.bf16 %v1078_v5, %v1077_v3 }
 0x20c   : > { %v1787_v11 = vpop.eup %1786  ;;  %1585 = vmatprep.subr.bf16.mxu1 %v1097_v10 }
 0x20d   : > { %v1789_v12 = vpop.eup %1788  ;;  %1586 = vmatpush3.bf16.msra.mxu1 %v1097_v10  ;;  %v1083_v17 = vmul.f32 %v1787_v11, %v2270_v9  ;;  %v1696_v9 = vld [vmem:[%s2373_s7 + $0x10] sm:$0xff]  }
 0x20e   : > { %v1791_v13 = vpop.eup %1790  ;;  %1587 = vmatprep.subr.bf16.mxu1 %v1098_v7  ;;  %v1081_v54 = vmul.f32 %v1789_v12, %v2272_v14  ;;  %v1697_v14 = vld [vmem:[%s2373_s7 + $0x18] sm:$0xff]  }
 0x20f   : > { %v1793_v15 = vpop.eup %1792  ;;  %v1084_v45 = vmul.f32 %v1791_v13, %v2275_v55  ;;  %v1892_v55 = vmov 0.0|0.0  }
 0x210   : > { %v1082_v47 = vmul.f32 %v1793_v15, %v2278_v24  ;;  %1620 = vmatprep.subr.bf16.mxu0 %v1892_v55  ;;  %v1117_v24 = vpop.permute.xlu1 %1116 }
 0x211   : > { %1588 = vmatpush3.bf16.msra.mxu1 %v1098_v7  ;;  %v1100_v60 = vpack.c.bf16 %v1084_v45, %v1083_v17 }
 0x212   : > { %v1099_v18 = vpack.c.bf16 %v1082_v47, %v1081_v54 }
 0x214   : > { %1589 = vmatprep.subr.bf16.mxu1 %v1099_v18  ;;  %v1127_v26 = vpop.permute.xlu1 %1126 }
 0x215   : > { %1590 = vmatpush3.bf16.msra.mxu1 %v1099_v18 }
 0x216   : > { %1591 = vmatprep.subr.bf16.mxu1 %v1100_v60 }
 0x218   : > { %v1137_v4 = vpop.permute.xlu1 %1136 }
 0x219   : > { %1592 = vmatpush3.bf16.msra.mxu1 %v1100_v60 }
 0x21c   : > { %1594 = vmatmul.mubr.bf16.vlgmr.msra.gmra.mrb[0].mxu1 %v1695_v20  ;;  %v1147_v44 = vpop.permute.xlu1 %1146 }
 0x21d   : > { %1597 = vmatprep.mubr.bf16.mxu1 %v1696_v9 }
 0x224   : > { %1598 = vmatmul.mubr.bf16.gmra.mrb[4].mxu1 %v1697_v14 }
 0x2ef   : > { %v1595_v27 = vpop.f32.mrb[0].mxu1 }
 0x2f0   : > { %v2308_v28 = vadd.f32 %v1595_v27, %v1122_v25  ;;  %v1207_v30 = vpop.f32.mrb[1].mxu1 }
 0x2f1   : > { %v1208_v33 = vadd.f32 %v1207_v30, %v1112_v22  ;;  %v1596_v34 = vpop.f32.mrb[2].mxu1  ;;  %v1299_v30 = vpop.permute.xlu0 %1298 }
 0x2f2   : > { %v1509_v35 = vmul.f32 -1.442695, %v2308_v28  ;;  %v1219_v36 = vadd.f32 %v1596_v34, %v1127_v26  ;;  %v1210_v38 = vpop.f32.mrb[3].mxu1 }
 0x2f3   : > { %v1507_v39 = vmul.f32 -1.442695, %v1208_v33  ;;  %v1211_v40 = vadd.f32 %v1210_v38, %v1117_v24 }
 0x2f4   : > { %1794 = vpow2.f32 %v1509_v35  ;;  %v1510_v41 = vmul.f32 -1.442695, %v1219_v36 }
 0x2f5   : > { %1796 = vpow2.f32 %v1507_v39  ;;  %v1508_v42 = vmul.f32 -1.442695, %v1211_v40 }
 0x2f6   : > { %1798 = vpow2.f32 %v1510_v41 }
 0x2f7   : > { %1800 = vpow2.f32 %v1508_v42  ;;  %v1599_v43 = vpop.f32.mrb[4].mxu1 }
 0x2f8   : > { %v1232_v16 = vadd.f32 %v1599_v43, %v1142_v8  ;;  %v1223_v57 = vpop.f32.mrb[5].mxu1 }
 0x2f9   : > { %v1224_v19 = vadd.f32 %v1223_v57, %v1132_v32  ;;  %v1600_v23 = vpop.f32.mrb[6].mxu1 }
 0x2fa   : > { %v1513_v46 = vmul.f32 -1.442695, %v1232_v16  ;;  %v1235_v48 = vadd.f32 %v1600_v23, %v1147_v44  ;;  %v1226_v49 = vpop.f32.mrb[7].mxu1 }
 0x2fb   : > { %v1511_v50 = vmul.f32 -1.442695, %v1224_v19  ;;  %v1227_v51 = vadd.f32 %v1226_v49, %v1137_v4 }
 0x2fc   : > { %1802 = vpow2.f32 %v1513_v46  ;;  %v1514_v52 = vmul.f32 -1.442695, %v1235_v48 }
 0x2fd   : > { %1804 = vpow2.f32 %v1511_v50  ;;  %v1512_v53 = vmul.f32 -1.442695, %v1227_v51 }
 0x2fe   : > { %v1795_v56 = vpop.eup %1794  ;;  %1806 = vpow2.f32 %v1514_v52 }
 0x2ff   : > { %v1797_v58 = vpop.eup %1796  ;;  %v1264_v59 = vadd.f32 1.0, %v1795_v56  ;;  %1808 = vpow2.f32 %v1512_v53 }
 0x300   : > { %v1799_v61 = vpop.eup %1798  ;;  %v1262_v62 = vadd.f32 1.0, %v1797_v58 }
 0x301   : > { %v1801_v63 = vpop.eup %1800  ;;  %1810 = vrcp.f32 %v1264_v59  ;;  %v1265_v0 = vadd.f32 1.0, %v1799_v61 }
 0x302   : > { %1812 = vrcp.f32 %v1262_v62  ;;  %v1263_v29 = vadd.f32 1.0, %v1801_v63 }
 0x303   : > { %1814 = vrcp.f32 %v1265_v0 }
 0x304   : > { %1816 = vrcp.f32 %v1263_v29 }
 0x306   : > { %v1803_v6 = vpop.eup %1802 }
 0x307   : > { %v1805_v31 = vpop.eup %1804  ;;  %v1268_v37 = vadd.f32 1.0, %v1803_v6 }
 0x308   : > { %v1807_v1 = vpop.eup %1806  ;;  %v1266_v2 = vadd.f32 1.0, %v1805_v31 }
 0x309   : > { %v1809_v3 = vpop.eup %1808  ;;  %1818 = vrcp.f32 %v1268_v37  ;;  %v1269_v5 = vadd.f32 1.0, %v1807_v1 }
 0x30a   : > { %1820 = vrcp.f32 %v1266_v2  ;;  %v1267_v7 = vadd.f32 1.0, %v1809_v3 }
 0x30b   : > { %v1811_v10 = vpop.eup %1810  ;;  %1822 = vrcp.f32 %v1269_v5 }
 0x30c   : > { %v1813_v11 = vpop.eup %1812  ;;  %1824 = vrcp.f32 %v1267_v7  ;;  %v1288_v15 = vmul.f32 %v1811_v10, %v2308_v28  ;;  %v1294_v28 = vld [vmem:[%s2375_s9] sm:$0x3] }
 0x30d   : > { %v1815_v12 = vpop.eup %1814  ;;  %v1286_v45 = vmul.f32 %v1813_v11, %v1208_v33 }
 0x30e   : > { %v1817_v13 = vpop.eup %1816  ;;  %v1289_v17 = vmul.f32 %v1815_v12, %v1219_v36 }
 0x30f   : > { %v1287_v54 = vmul.f32 %v1817_v13, %v1211_v40 }
 0x310   : > { %v1624_v47 = vpack.c.bf16 %v1289_v17, %v1288_v15 }
 0x311   : > { %v1621_v60 = vpack.c.bf16 %v1287_v54, %v1286_v45 }
 0x313   : > { %v1819_v18 = vpop.eup %1818  ;;  %1622 = vmatpush3.bf16.msra.mxu0 %v1621_v60 }
 0x314   : > { %v1821_v20 = vpop.eup %1820  ;;  %1623 = vmatprep.subr.bf16.mxu0 %v1892_v55  ;;  %v1292_v21 = vmul.f32 %v1819_v18, %v1232_v16 }
 0x315   : > { %v1823_v9 = vpop.eup %1822  ;;  %v1290_v24 = vmul.f32 %v1821_v20, %v1224_v19 }
 0x316   : > { %v1825_v14 = vpop.eup %1824  ;;  %v1293_v22 = vmul.f32 %v1823_v9, %v1235_v48 }
 0x317   : > { %v1291_v25 = vmul.f32 %v1825_v14, %v1227_v51  ;;  %1625 = vmatpush3.bf16.msra.mxu0 %v1624_v47 }
 0x318   : > { %v1630_v26 = vpack.c.bf16 %v1293_v22, %v1292_v21  ;;  %1626 = vmatprep.subr.bf16.mxu0 %v1892_v55 }
 0x319   : > { %v1627_v27 = vpack.c.bf16 %v1291_v25, %v1290_v24 }
 0x31b   : > { %1628 = vmatpush3.bf16.msra.mxu0 %v1627_v27 }
 0x31c   : > { %1629 = vmatprep.subr.bf16.mxu0 %v1892_v55 }
 0x31f   : > { %1631 = vmatpush3.bf16.msra.mxu0 %v1630_v26 }
 0x322   : > { %1618 = vmatmul.mubr.msk.f32.vlgmr.msra.gmra.mrb[16].mxu0 %vm851_vm0, %v1294_v28 }
 0x3f5   : > { %v1370_v32 = vpop.f32.mrb[16].mxu0 }
 0x3f6   : > { %v1371_v33 = vadd.f32 %v1370_v32, %v1299_v30  ;;  %v1619_v34 = vpop.f32.mrb[17].mxu0 }
 0x3f8   : > { %1374 = vst [vmem:[%s388_s15] sm:$0x3] %v1371_v33 }
 0x3f9   : > { %1839 = shalt.err (!%p1836_p3)
}
 0x3fa   : > { %s1840_s12 = scalar_lea.hbm %s2324_s25, 32  ;;  %s1844_s22 = scalar_lea.hbm %s2377_s11, 64 }
 0x3fb   : > { %p1841_p4 = scmp.ne.s32.totalorder %s2324_s25, %s1840_s12  ;;  %p1845_p9 = scmp.lt.u32.totalorder %s2324_s25, %s2377_s11 }
 0x3fc   : > { %p1846_p10 = scmp.lt.u32.totalorder %s1844_s22, %s1840_s12  ;;  %p1848_p12 = scmp.lt.u32.totalorder %s1840_s12, %s2324_s25 }
 0x3fd   : > { %p1842_p7 = pnand %p1841_p4, %p1994_p5 }
 0x3fe   : > { %p1847_p11 = por %p1846_p10, %p1845_p9 }
 0x3ff   : > { %p1843_p8 = pneg %p1842_p7 }
 0x400   : > { %p1849_p13 = por %p1848_p12, %p1847_p11 }
 0x402   : > { %p1850_p0 = pnand %p1849_p13, %p1843_p8 }
 0x404   : > { %1853 = shalt.err (!%p1850_p0)
}
 0x405   : > { %1632 = dma.vmem_to_hbm [thread:$0]  (%p1994_p5), %s2326_s16, 32, %s2324_s25, %s1376_s29  }
 0x406 PF: > { %p1638_p1 = scmp.ge.s32.totalorder %s1888_s20, 2  ;;  %s1401_s0 = sand.u32 1, %s1876_s17  }
 0x407   : > { %s1402_s30 = scalar_lea.sflag [#allocation3], %s1401_s0 }
 0x408   : > { %p1635_p2 = pnand %p1638_p1, %p1998_p6 }
 0x40a   : > { %1871 = dma.done.wait (!%p1635_p2), %s1402_s30, 32  }
 0x40b   : > { %1873 = vsyncadd (!%p1635_p2), %s1402_s30, 4294967264  ;;  %p21_p3 = scmp.ge.s32.totalorder %s1981_s23, 4   ;;  %s2382_s17 = smov %s1880_s18 }
 0x40c   : > { %s2383_s18 = smov %s1884_s19  ;;  %s2384_s19 = smov %s1992_s26 }
 0x40d   : > { %s2385_s20 = smov %s1981_s23  ;;  %23 = sbr.rel (!%p21_p3) target bundleno = 5 (0x5), region = 102 }
 0x414   :  { %1407 = vsyncpa [#allocation3], 1 }
 0x415   :  { %1409 = vsyncpa [#allocation3 + $0x1], 1 }

</bundles_post_ra>
